<compile_context>
chip_gen: v6e
topology: v6e:2x2x1
jax: 0.10.0
libtpu: 0.0.40
codegen_flags: <defaults>
</compile_context>

<pallas_src>
import functools

import jax
import jax.numpy as jnp
from jax.experimental import pallas as pl
from jax.experimental.pallas import tpu as pltpu


def _round_up(n, m):
    return ((n + m - 1) // m) * m


def _cdiv(a, b):
    return -(-a // b)


def _label_smoothing_kernel(
    x_ref, picked_ref, out_ref, m_scr, l_scr, sx_scr,
    *, confidence, smooth_over_c, tc, num_classes, mask_last,
):
    # x_ref: (TB, TC) logits tile; picked_ref: (TB, 1) f32 x[i, tgt_i]; out_ref: (TB, 1) f32.
    j = pl.program_id(1)
    nj = pl.num_programs(1)

    @pl.when(j == 0)
    def _init():
        m_scr[...] = jnp.full_like(m_scr, -jnp.inf)
        l_scr[...] = jnp.zeros_like(l_scr)
        sx_scr[...] = jnp.zeros_like(sx_scr)

    def _update(masked):
        # TODO(synk): for bf16 production logits, keep the max/sum reductions in
        # bf16 on v6e/v7x and upcast only for the exp/lse accumulation.
        x = x_ref[...].astype(jnp.float32)  # (TB, TC)
        if masked:
            # Only the (single) last class tile can contain columns >= num_classes.
            cls = j * tc + jax.lax.broadcasted_iota(jnp.int32, x.shape, 1)
            valid = cls < num_classes
            x_max_src = jnp.where(valid, x, -jnp.inf)
            x_sum_src = jnp.where(valid, x, 0.0)
        else:
            x_max_src = x
            x_sum_src = x

        # Online logsumexp update. Every class tile has >= 1 valid column
        # (grid = cdiv(C, tc)), so m_new stays finite and exp(-inf - m_new) = 0
        # performs the post-exp masking for free.
        blk_max = jnp.max(x_max_src, axis=-1, keepdims=True)          # (TB, 1)
        m_new = jnp.maximum(m_scr[...], blk_max)
        p = jnp.exp(x_max_src - m_new)                                 # EUP
        l_scr[...] = l_scr[...] * jnp.exp(m_scr[...] - m_new) + jnp.sum(
            p, axis=-1, keepdims=True
        )
        m_scr[...] = m_new

        # Running sum of logits (for the smoothing/mean term).
        sx_scr[...] += jnp.sum(x_sum_src, axis=-1, keepdims=True)

    if mask_last:
        @pl.when(j < nj - 1)
        def _unmasked():
            _update(masked=False)

        @pl.when(j == nj - 1)
        def _masked():
            _update(masked=True)
    else:
        _update(masked=False)

    @pl.when(j == nj - 1)
    def _finalize():
        lse = m_scr[...] + jnp.log(l_scr[...])                         # (TB, 1)
        # confidence + smoothing == 1, so:
        #   loss = lse - confidence * x[tgt] - (smoothing / C) * sum_c(x)
        loss = (
            lse
            - confidence * picked_ref[...].astype(jnp.float32)
            - smooth_over_c * sx_scr[...]
        )
        out_ref[...] = loss.astype(out_ref.dtype)


def label_smoothing_loss(x, target, smoothing=0.1, *, tb=None, tc=None,
                         vmem_limit_bytes=48 << 20):
    """x: (B, C) float logits, target: (B,) int class ids -> scalar float32 loss."""
    confidence = 1.0 - smoothing
    B, C = x.shape

    # Class tile: large (4096) to amortize the per-grid-step overhead; whole C
    # when it is small enough (single class tile => no online-lse cross-tile work).
    if tc is None:
        tc = min(4096, _round_up(C, 128))
    tc = max(128, min(int(tc), _round_up(C, 128)))

    # Batch tile: large, but capped so there are >= 2 batch tiles when B allows it,
    # keeping both TensorCores busy on v7x via the "parallel" batch axis.
    if tb is None:
        tb = min(512, _round_up(B, 8))
        if B > 8:
            tb = min(tb, _round_up(_cdiv(B, 2), 8))
    tb = max(8, min(int(tb), _round_up(B, 8)))

    grid = (pl.cdiv(B, tb), pl.cdiv(C, tc))
    mask_last = (C % tc) != 0

    # Target gather moved out of the hot loop: touches only B elements and rides
    # along as a (B, 1) input whose block index is independent of the class axis.
    tgt2d = target.astype(jnp.int32).reshape(B, 1)
    picked = jnp.take_along_axis(x, tgt2d, axis=-1).astype(jnp.float32)   # (B, 1)

    kernel = functools.partial(
        _label_smoothing_kernel,
        confidence=float(confidence),
        smooth_over_c=float(smoothing) / float(C),
        tc=int(tc),
        num_classes=int(C),
        mask_last=bool(mask_last),
    )

    itemsize = jnp.dtype(x.dtype).itemsize
    per_row = pl.pallas_call(
        kernel,
        out_shape=jax.ShapeDtypeStruct((B, 1), jnp.float32),
        grid_spec=pltpu.PrefetchScalarGridSpec(
            num_scalar_prefetch=0,
            grid=grid,
            in_specs=[
                pl.BlockSpec((tb, tc), lambda i, j: (i, j)),   # logits tile
                pl.BlockSpec((tb, 1), lambda i, j: (i, 0)),    # picked x[i, tgt_i]
            ],
            out_specs=pl.BlockSpec((tb, 1), lambda i, j: (i, 0)),
            scratch_shapes=[
                pltpu.VMEM((tb, 1), jnp.float32),  # running max
                pltpu.VMEM((tb, 1), jnp.float32),  # running exp-sum
                pltpu.VMEM((tb, 1), jnp.float32),  # running sum(x)
            ],
        ),
        compiler_params=pltpu.CompilerParams(
            dimension_semantics=("parallel", "arbitrary"),
            vmem_limit_bytes=int(vmem_limit_bytes),
        ),
        cost_estimate=pl.CostEstimate(
            flops=5 * B * C,
            transcendentals=B * C,
            bytes_accessed=B * C * itemsize + 3 * B * 4,
        ),
    )(x, picked)

    # Tiny final reduction outside the kernel (sum over B rows, then /B).
    return jnp.sum(per_row) / B


def _reference(x, target, smoothing):
    confidence = 1.0 - smoothing
    logprobs = jax.nn.log_softmax(x.astype(jnp.float32), axis=-1)
    nll = -jnp.take_along_axis(
        logprobs, target[:, None].astype(jnp.int32), axis=-1
    )[:, 0]
    smooth = -jnp.mean(logprobs, axis=-1)
    return jnp.mean(confidence * nll + smoothing * smooth)


if __name__ == "__main__":
    key = jax.random.PRNGKey(0)
    kx, kt, kx2, kt2 = jax.random.split(key, 4)

    # Test 1: tile-aligned shapes, explicit small tiles (2 batch x 3 class tiles).
    B, C = 16, 384
    smoothing = 0.1
    x = jax.random.normal(kx, (B, C), dtype=jnp.float32)
    target = jax.random.randint(kt, (B,), 0, C, dtype=jnp.int32)

    loss = label_smoothing_loss(x, target, smoothing=smoothing, tb=8, tc=128)
    loss = jax.block_until_ready(loss)
    ref = _reference(x, target, smoothing)
    assert jnp.allclose(loss, ref, rtol=1e-5, atol=1e-5), (loss, ref)

    # Test 2: default tiles on the same inputs (single class tile, 2 batch tiles).
    loss_d = label_smoothing_loss(x, target, smoothing=smoothing)
    loss_d = jax.block_until_ready(loss_d)
    assert jnp.allclose(loss_d, ref, rtol=1e-5, atol=1e-5), (loss_d, ref)

    # Test 3: ragged shapes (masked last class tile + partial batch tile).
    B2, C2 = 12, 200
    smoothing2 = 0.2
    x2 = jax.random.normal(kx2, (B2, C2), dtype=jnp.float32)
    target2 = jax.random.randint(kt2, (B2,), 0, C2, dtype=jnp.int32)

    loss2 = label_smoothing_loss(x2, target2, smoothing=smoothing2, tb=8, tc=128)
    loss2 = jax.block_until_ready(loss2)
    ref2 = _reference(x2, target2, smoothing2)
    assert jnp.allclose(loss2, ref2, rtol=1e-5, atol=1e-5), (loss2, ref2)

    # Test 4: ragged shapes with default (large) tiles — exercises the
    # partial-batch-tile + masked-class-tile path at production-style defaults.
    loss2_d = label_smoothing_loss(x2, target2, smoothing=smoothing2)
    loss2_d = jax.block_until_ready(loss2_d)
    assert jnp.allclose(loss2_d, ref2, rtol=1e-5, atol=1e-5), (loss2_d, ref2)

    print("KERNEL_OK")
</pallas_src>

<mosaic_0001>
module attributes {stable_mosaic.version = 11 : i64} {
  func.func @_label_smoothing_kernel(%arg0: i32, %arg1: i32, %arg2: memref<8x128xf32, #tpu.memory_space<vmem>>, %arg3: memref<8x1xf32, #tpu.memory_space<vmem>>, %arg4: memref<8x1xf32, #tpu.memory_space<vmem>>, %arg5: memref<8x1xf32, #tpu.memory_space<vmem>>, %arg6: memref<8x1xf32, #tpu.memory_space<vmem>>, %arg7: memref<8x1xf32, #tpu.memory_space<vmem>>) attributes {dimension_semantics = [#tpu.dimension_semantics<parallel>, #tpu.dimension_semantics<arbitrary>], iteration_bounds = array<i64: 2, 3>, scalar_prefetch = 0 : i64, scratch_operands = 3 : i64, tpu.core_type = #tpu.core_type<tc>, window_params = [{transform_indices = @transform_0, window_bounds = array<i64: 8, 128>}, {transform_indices = @transform_1, window_bounds = array<i64: 8, 1>}, {transform_indices = @transform_2, window_bounds = array<i64: 8, 1>}]} {
    %c0_i32 = arith.constant 0 : i32
    %0 = arith.cmpi eq, %arg1, %c0_i32 : i32
    %1 = arith.extui %0 : i1 to i32
    %c0_i32_0 = arith.constant 0 : i32
    %2 = arith.cmpi ne, %1, %c0_i32_0 : i32
    scf.if %2 {
      %cst_19 = arith.constant 0xFF800000 : f32
      %29 = vector.broadcast %cst_19 : f32 to vector<8x1xf32>
      %c0_20 = arith.constant 0 : index
      %c0_21 = arith.constant 0 : index
      %30 = vector.load %arg5[%c0_20, %c0_21] : memref<8x1xf32, #tpu.memory_space<vmem>>, vector<8x1xf32>
      tpu.vector_store %arg5[%c0_20, %c0_21], %29 {strides = array<i32>} : memref<8x1xf32, #tpu.memory_space<vmem>>, vector<8x1xf32>,
      %cst_22 = arith.constant 0.000000e+00 : f32
      %31 = vector.broadcast %cst_22 : f32 to vector<8x1xf32>
      %c0_23 = arith.constant 0 : index
      %c0_24 = arith.constant 0 : index
      %32 = vector.load %arg6[%c0_23, %c0_24] : memref<8x1xf32, #tpu.memory_space<vmem>>, vector<8x1xf32>
      tpu.vector_store %arg6[%c0_23, %c0_24], %31 {strides = array<i32>} : memref<8x1xf32, #tpu.memory_space<vmem>>, vector<8x1xf32>,
      %cst_25 = arith.constant 0.000000e+00 : f32
      %33 = vector.broadcast %cst_25 : f32 to vector<8x1xf32>
      %c0_26 = arith.constant 0 : index
      %c0_27 = arith.constant 0 : index
      %34 = vector.load %arg7[%c0_26, %c0_27] : memref<8x1xf32, #tpu.memory_space<vmem>>, vector<8x1xf32>
      tpu.vector_store %arg7[%c0_26, %c0_27], %33 {strides = array<i32>} : memref<8x1xf32, #tpu.memory_space<vmem>>, vector<8x1xf32>,
    } else {
    }
    %c0 = arith.constant 0 : index
    %c0_1 = arith.constant 0 : index
    %3 = vector.load %arg2[%c0, %c0_1] : memref<8x128xf32, #tpu.memory_space<vmem>>, vector<8x128xf32>
    %cst = arith.constant dense<0xFF800000> : vector<8xf32>
    %4 = vector.multi_reduction <maximumf>, %3, %cst [1] : vector<8x128xf32> to vector<8xf32>
    %5 = vector.shape_cast %4 : vector<8xf32> to vector<8x1xf32>
    %c0_2 = arith.constant 0 : index
    %c0_3 = arith.constant 0 : index
    %6 = vector.load %arg5[%c0_2, %c0_3] : memref<8x1xf32, #tpu.memory_space<vmem>>, vector<8x1xf32>
    %7 = arith.maximumf %6, %5 : vector<8x1xf32>
    %8 = vector.broadcast %7 : vector<8x1xf32> to vector<8x128xf32>
    %9 = arith.subf %3, %8 : vector<8x128xf32>
    %10 = math.exp %9 : vector<8x128xf32>
    %c0_4 = arith.constant 0 : index
    %c0_5 = arith.constant 0 : index
    %11 = vector.load %arg6[%c0_4, %c0_5] : memref<8x1xf32, #tpu.memory_space<vmem>>, vector<8x1xf32>
    %c0_6 = arith.constant 0 : index
    %c0_7 = arith.constant 0 : index
    %12 = vector.load %arg5[%c0_6, %c0_7] : memref<8x1xf32, #tpu.memory_space<vmem>>, vector<8x1xf32>
    %13 = arith.subf %12, %7 : vector<8x1xf32>
    %14 = math.exp %13 : vector<8x1xf32>
    %15 = arith.mulf %11, %14 : vector<8x1xf32>
    %cst_8 = arith.constant dense<0.000000e+00> : vector<8xf32>
    %16 = vector.multi_reduction <add>, %10, %cst_8 [1] : vector<8x128xf32> to vector<8xf32>
    %17 = vector.shape_cast %16 : vector<8xf32> to vector<8x1xf32>
    %18 = arith.addf %15, %17 : vector<8x1xf32>
    %c0_9 = arith.constant 0 : index
    %c0_10 = arith.constant 0 : index
    %19 = vector.load %arg6[%c0_9, %c0_10] : memref<8x1xf32, #tpu.memory_space<vmem>>, vector<8x1xf32>
    tpu.vector_store %arg6[%c0_9, %c0_10], %18 {strides = array<i32>} : memref<8x1xf32, #tpu.memory_space<vmem>>, vector<8x1xf32>,
    %c0_11 = arith.constant 0 : index
    %c0_12 = arith.constant 0 : index
    %20 = vector.load %arg5[%c0_11, %c0_12] : memref<8x1xf32, #tpu.memory_space<vmem>>, vector<8x1xf32>
    tpu.vector_store %arg5[%c0_11, %c0_12], %7 {strides = array<i32>} : memref<8x1xf32, #tpu.memory_space<vmem>>, vector<8x1xf32>,
    %c0_13 = arith.constant 0 : index
    %c0_14 = arith.constant 0 : index
    %21 = vector.load %arg7[%c0_13, %c0_14] : memref<8x1xf32, #tpu.memory_space<vmem>>, vector<8x1xf32>
    %cst_15 = arith.constant dense<0.000000e+00> : vector<8xf32>
    %22 = vector.multi_reduction <add>, %3, %cst_15 [1] : vector<8x128xf32> to vector<8xf32>
    %23 = vector.shape_cast %22 : vector<8xf32> to vector<8x1xf32>
    %24 = arith.addf %21, %23 : vector<8x1xf32>
    %c0_16 = arith.constant 0 : index
    %c0_17 = arith.constant 0 : index
    %25 = vector.load %arg7[%c0_16, %c0_17] : memref<8x1xf32, #tpu.memory_space<vmem>>, vector<8x1xf32>
    tpu.vector_store %arg7[%c0_16, %c0_17], %24 {strides = array<i32>} : memref<8x1xf32, #tpu.memory_space<vmem>>, vector<8x1xf32>,
    %c2_i32 = arith.constant 2 : i32
    %26 = arith.cmpi eq, %arg1, %c2_i32 : i32
    %27 = arith.extui %26 : i1 to i32
    %c0_i32_18 = arith.constant 0 : i32
    %28 = arith.cmpi ne, %27, %c0_i32_18 : i32
    scf.if %28 {
      %c0_19 = arith.constant 0 : index
      %c0_20 = arith.constant 0 : index
      %29 = vector.load %arg5[%c0_19, %c0_20] : memref<8x1xf32, #tpu.memory_space<vmem>>, vector<8x1xf32>
      %c0_21 = arith.constant 0 : index
      %c0_22 = arith.constant 0 : index
      %30 = vector.load %arg6[%c0_21, %c0_22] : memref<8x1xf32, #tpu.memory_space<vmem>>, vector<8x1xf32>
      %31 = math.log %30 : vector<8x1xf32>
      %32 = arith.addf %29, %31 : vector<8x1xf32>
      %c0_23 = arith.constant 0 : index
      %c0_24 = arith.constant 0 : index
      %33 = vector.load %arg3[%c0_23, %c0_24] : memref<8x1xf32, #tpu.memory_space<vmem>>, vector<8x1xf32>
      %cst_25 = arith.constant 0.899999976 : f32
      %34 = vector.broadcast %cst_25 : f32 to vector<8x1xf32>
      %35 = arith.mulf %34, %33 : vector<8x1xf32>
      %36 = arith.subf %32, %35 : vector<8x1xf32>
      %c0_26 = arith.constant 0 : index
      %c0_27 = arith.constant 0 : index
      %37 = vector.load %arg7[%c0_26, %c0_27] : memref<8x1xf32, #tpu.memory_space<vmem>>, vector<8x1xf32>
      %cst_28 = arith.constant 2.6041668E-4 : f32
      %38 = vector.broadcast %cst_28 : f32 to vector<8x1xf32>
      %39 = arith.mulf %38, %37 : vector<8x1xf32>
      %40 = arith.subf %36, %39 : vector<8x1xf32>
      %c0_29 = arith.constant 0 : index
      %c0_30 = arith.constant 0 : index
      %41 = vector.load %arg4[%c0_29, %c0_30] : memref<8x1xf32, #tpu.memory_space<vmem>>, vector<8x1xf32>
      tpu.vector_store %arg4[%c0_29, %c0_30], %40 {strides = array<i32>} : memref<8x1xf32, #tpu.memory_space<vmem>>, vector<8x1xf32>,
    } else {
    }
    return
  }
  func.func @transform_0(%arg0: i32, %arg1: i32) -> (i32, i32) {
    %c0_i32 = arith.constant 0 : i32
    return %arg0, %arg1 : i32, i32
  }
  func.func @transform_1(%arg0: i32, %arg1: i32) -> (i32, i32) {
    %c0_i32 = arith.constant 0 : i32
    %c0_i32_0 = arith.constant 0 : i32
    return %arg0, %c0_i32 : i32, i32
  }
  func.func @transform_2(%arg0: i32, %arg1: i32) -> (i32, i32) {
    %c0_i32 = arith.constant 0 : i32
    %c0_i32_0 = arith.constant 0 : i32
    return %arg0, %c0_i32 : i32, i32
  }
}

</mosaic_0001>

<bundles_post_ra>
// kernel: tpu_custom_call.1
= control target key start
LH: loop header
LB: loop body
LE: loop exit
PB: predicated region body
PF: predicated region fallthrough
CT: control target
= control target key end

     0   :  { %7 = vsyncpa [#allocation6], 0  ;;  %s686_s0 = inlined_call_operand.hbm [shape: f32[16,384], index: 0, kind: input, shape index: {}]   ;;  %s687_s1 = inlined_call_operand.vmem [shape: f32[16,1], index: 1, kind: input, shape index: {}]   ;;  %s688_s2 = inlined_call_operand.vmem [shape: f32[16,1], index: 2, kind: output, shape index: {}]  }
   0x1   :  { %9 = vsyncpa [#allocation6 + $0x1], 0  ;;  %s546_s9 = smov 0   ;;  %s548_s10 = smov 0  }
   0x2   :  { %s550_s11 = smov 0   ;;  %s552_s12 = smov 0  }
   0x3   :  { %s554_s13 = smov 0   ;;  %s556_s14 = smov 0  }
   0x4   :  { %s558_s15 = smov 0   ;;  %s560_s16 = smov 0  }
   0x5 LB: > { %s335_s17 = sadd.s32 4294967295, %s525_s16   ;;  %s24_s18 = sadd.s32 1, %s517_s14  ;;  %s525_s16 = sphi %s560_s16, %s15_s16   ;;  %s521_s15 = sphi %s558_s15, %s698_s15   ;;  %s517_s14 = sphi %s556_s14, %s697_s14   ;;  %s513_s13 = sphi %s554_s13, %s696_s13   ;;  %s509_s12 = sphi %s552_s12, %s695_s12   ;;  %s505_s11 = sphi %s550_s11, %s694_s11   ;;  %s501_s10 = sphi %s548_s10, %s693_s10   ;;  %s497_s9 = sphi %s546_s9, %s692_s9  }
   0x6   : > { %p25_p0 = scmp.ge.s32.totalorder %s24_s18, 3  ;;  %s27_s19 = sadd.s32 1, %s521_s15 }
   0x7   : > { %s36_s20 = sadd.s32 1, %s505_s11  ;;  %p43_p1 = scmp.ne.s32.totalorder %s505_s11, %s501_s10 }
   0x8   : > { %s700_s18 = smov (%p25_p0, %s24_s18), 0  ;;  %s702_s19 = smov (!%p25_p0, %s27_s19), %s521_s15 }
   0x9   : > { %s32_s21 = ssub.s32 %s517_s14, %s700_s18  ;;  %p44_p2 = scmp.eq.s32.totalorder %s525_s16, 0 }
   0xa   : > { %p29_p3 = scmp.ge.s32.totalorder %s702_s19, 2  ;;  %p49_p4 = scmp.ne.s32.totalorder %s501_s10, %s497_s9 }
   0xb   : > { %p597_p5 = por %p44_p2, %p43_p1  ;;  %p50_p6 = scmp.eq.s32.totalorder %s335_s17, 0 }
   0xc   : > { %s704_s19 = smov (%p29_p3, %s702_s19), 0  ;;  %p356_p8 = scmp.lt.s32.totalorder %s525_s16, 6 }
   0xd   : > { %p603_p7 = por %p50_p6, %p49_p4  ;;  %s31_s24 = ssub.s32 %s521_s15, %s704_s19 }
   0xe   : > { %s33_s25 = sor.u32 %s32_s21, %s31_s24  ;;  %s125_s26 = sand.u32 1, %s505_s11  }
   0xf   : > { %p34_p9 = scmp.eq.s32.totalorder %s33_s25, 0  ;;  %s339_s27 = sshll.u32 %s125_s26, 3 }
  0x10   : > { %s349_s28 = smul.u32 3, %s521_s15  ;;  %s129_s4 = scalar_lea.vmem [#allocation5], %s339_s27 }
  0x11   : > { %s613_s29 = scalar_select %p34_p9, %s505_s11, %s36_s20  }
  0x12   : > { %s134_s30 = sadd.s32 %s517_s14, %s349_s28  ;;  %s138_s5 = sshll.u32 %s129_s4, 4  ;;  %s139_s5 = int_to_ptr.vmem [resolvable:$true] %s138_s5 }
  0x13   : > { %s340_s3 = sshll.u32 %s134_s30, 7  ;;  %p623_p10 = pnand %p356_p8, %p597_p5 }
  0x14   : > { %s136_s8 = scalar_lea.hbm %s686_s0, %s340_s3  ;;  %p341_p11 = scmp.ge.s32.totalorder %s525_s16, 1 }
  0x15   : > { %p150_p12 = scmp.lt.s32.totalorder %s525_s16, 7  ;;  %s126_s17 = scalar_lea.sflag [#allocation6], %s125_s26 }
  0x16   : > { %p433_p13 = pneg %p623_p10  ;;  %s444_s20 = scalar_lea.vmem %s139_s5, 128 }
  0x17   : > { %p445_p0 = scmp.ne.s32.totalorder %s139_s5, %s444_s20  ;;  %s527_s21 = smov [#allocation5]  }
  0x18   : > { %s449_s24 = sshll.u32 %s527_s21, 4  ;;  %s450_s24 = int_to_ptr.vmem [resolvable:$false] %s449_s24 }
  0x19   : > { %p447_p1 = pnand %p445_p0, %p433_p13  ;;  %s451_s25 = scalar_lea.vmem %s450_s24, 256 }
  0x1a   : > { %p452_p3 = scmp.lt.s32.totalorder %s139_s5, %s450_s24  ;;  %p453_p4 = scmp.lt.s32.totalorder %s451_s25, %s444_s20 }
  0x1b   : > { %p448_p2 = pneg %p447_p1 }
  0x1c   : > { %p454_p5 = por %p453_p4, %p452_p3 }
  0x1e   : > { %p455_p6 = pnand %p454_p5, %p448_p2 }
  0x20   : > { %458 = shalt.err (!%p455_p6)
}
  0x21   : > { %355 = dma.hbm_to_vmem [thread:$0]  (!%p623_p10), %s136_s8, 128, %s139_s5, %s126_s17  }
  0x22   : > { %p151_p8 = pnand %p341_p11, %p150_p12 }
  0x23   : > { %s156_s22 = sand.u32 (!%p151_p8), 1, %s501_s10  }
  0x24   : > { %154 = sbr.rel (%p151_p8) target bundleno = 506 (0x1fa), region = 28  ;;  %s342_s26 = sshll.u32 (!%p151_p8), %s156_s22, 3 }
  0x25   : > { %s157_s27 = scalar_lea.sflag (!%p151_p8), [#allocation6], %s156_s22  ;;  %s160_s28 = scalar_lea.vmem (!%p151_p8), [#allocation5], %s342_s26 }
  0x29   : > { %492 = dma.done.wait (%p603_p7), %s157_s27, 128  }
  0x2a   : > { %494 = vsyncadd (%p603_p7), %s157_s27, 4294967168  ;;  %p184_p9 = scmp.lt.s32.totalorder %s513_s13, 1  ;;  %p345_p10 = scmp.ne.s32.totalorder %s509_s12, 0 }
  0x2c   : > { %s706_s13 = smov (!%p184_p9, %s513_s13), 1  ;;  %195 = sbr.rel (%p345_p10) target bundleno = 52 (0x34), region = 36 }
  0x2d   : > { %s343_s30 = sshll.u32 %s706_s13, 3 }
  0x2e   : > { %s647_s5 = scalar_lea.vmem %s687_s1, %s343_s30  ;;  %s652_s8 = scalar_lea.vmem %s688_s2, %s343_s30 }
  0x31   : > { %vm196_vm0 = vcmask 7168   ;;  %v528_v0 = vmov -inf   ;;  %v529_v1 = vmov 0.0  }
  0x32   : > { %197 = vst.msk [vmem:[#allocation2] sm:$0xff] %vm196_vm0, %v528_v0  ;;  %198 = vst.msk [vmem:[#allocation3] sm:$0xff] %vm196_vm0, %v529_v1 }
  0x33   : > { %199 = vst.msk [vmem:[#allocation4] sm:$0xff] %vm196_vm0, %v529_v1 }
  0x34 PF: > { %v200_v2 = vld [vmem:[%s160_s28] sm:$0xff]  ;;  %v530_v3 = vmov 0   ;;  %vm221_vm1 = vcmask 7168   ;;  %p346_p7 = scmp.ne.s32.totalorder %s509_s12, 2 }
  0x35   : > { %201 = vmax.xlane.f32.xlu0 %v200_v2 }
  0x36   : > { %424 = vset.pattern.permute.xlu0 %v530_v3 }
  0x39   : > { %v203_v4 = vld [vmem:[#allocation2] sm:$0xff]  ;;  %v213_v14 = vld [vmem:[#allocation3] sm:$0xff] }
  0x3a   : > { %v224_v18 = vld [vmem:[#allocation4] sm:$0xff] }
  0xbe   : > { %v202_v5 = vpop.xlane.xlu0 %201 }
  0xbf   : > { %v204_v6 = vmax.f32 %v203_v4, %v202_v5 }
  0xc1   : > { %v214_v7 = vsub.f32 %v203_v4, %v204_v6  ;;  %223 = vst.msk [vmem:[#allocation2] sm:$0xff] %vm221_vm1, %v204_v6  ;;  %207 = vperm.xlu0 %424, %v204_v6  }
  0xc3   : > { %v215_v12 = vmul.f32 1.442695, %v214_v7 }
 0x13c   : > { %v208_v8 = vpop.permute.xlu0 %207 }
 0x13d   : > { %v210_v9 = vsub.f32 %v200_v2, %v208_v8 }
 0x13f   : > { %v211_v10 = vmul.f32 1.442695, %v210_v9 }
 0x141   : > { %425 = vpow2.f32 %v211_v10 }
 0x142   : > { %427 = vpow2.f32 %v215_v12 }
 0x14e   : > { %v426_v11 = vpop.eup %425 }
 0x14f   : > { %218 = vadd.xlane.f32.xlu1 %v426_v11  ;;  %v428_v13 = vpop.eup %427 }
 0x150   : > { %v217_v15 = vmul.f32 %v428_v13, %v213_v14 }
 0x153   : > { %225 = vadd.xlane.f32.xlu1 %v200_v2 }
 0x1d8   : > { %v219_v16 = vpop.xlane.xlu1 %218 }
 0x1d9   : > { %v220_v17 = vadd.f32 %v219_v16, %v217_v15 }
 0x1db   : > { %222 = vst.msk [vmem:[#allocation3] sm:$0xff] %vm221_vm1, %v220_v17  ;;  %232 = sbr.rel (%p346_p7) target bundleno = 506 (0x1fa), region = 40 }
 0x1dc   : > { %v226_v19 = vpop.xlane.xlu1 %225 }
 0x1dd   : > { %v227_v20 = vadd.f32 %v226_v19, %v224_v18 }
 0x1df   : > { %228 = vst.msk [vmem:[#allocation4] sm:$0xff] %vm221_vm1, %v227_v20 }
 0x1e0   : > { %v238_v22 = vld [vmem:[%s647_s5] sm:$0xff] }
 0x1e1   : > { %v233_v24 = vld [vmem:[#allocation2] sm:$0xff]  ;;  %v239_v27 = vmul.f32 0.9, %v238_v22 }
 0x1e2   : > { %v234_v21 = vld [vmem:[#allocation3] sm:$0xff] }
 0x1e3   : > { %429 = vlog2.f32 %v234_v21 }
 0x1e6   : > { %v241_v25 = vld [vmem:[#allocation4] sm:$0xff] }
 0x1e7   : > { %v242_v29 = vmul.f32 0.00026041668, %v241_v25 }
 0x1f0   : > { %v430_v23 = vpop.eup %429 }
 0x1f1   : > { %v236_v26 = vmul.f32 0.6931472, %v430_v23 }
 0x1f3   : > { %v237_v28 = vadd.f32 %v236_v26, %v233_v24 }
 0x1f5   : > { %v240_v30 = vsub.f32 %v237_v28, %v239_v27 }
 0x1f7   : > { %v243_v31 = vsub.f32 %v240_v30, %v242_v29 }
 0x1f9   : > { %244 = vst.msk [vmem:[%s652_s8] sm:$0xff] %vm221_vm1, %v243_v31 }
 0x1fa PF: > { %s15_s16 = sadd.s32 1, %s525_s16   ;;  %s692_s9 = smov %s501_s10 }
 0x1fb   : > { %p12_p11 = scmp.ge.s32.totalorder %s15_s16, 8   ;;  %s693_s10 = smov %s505_s11 }
 0x1fc   : > { %s694_s11 = smov %s613_s29  ;;  %s695_s12 = smov %s517_s14 }
 0x1fd   : > { %s696_s13 = smov %s521_s15  ;;  %s697_s14 = smov %s700_s18 }
 0x1fe   : > { %s698_s15 = smov %s704_s19  ;;  %14 = sbr.rel (!%p12_p11) target bundleno = 5 (0x5), region = 79 }
 0x203   :  { %264 = vsyncpa [#allocation6], 1 }
 0x204   :  { %266 = vsyncpa [#allocation6 + $0x1], 1 }

</bundles_post_ra>
